<compile_context>
chip_gen: v7x
topology: tpu7x:2x2x1
jax: 0.10.0
libtpu: 0.0.40
codegen_flags: <defaults>
</compile_context>

<pallas_src>
import math
from functools import lru_cache

import jax
import jax.numpy as jnp
from jax import lax
from jax.experimental import pallas as pl
from jax.experimental.pallas import tpu as pltpu


# ----------------------------------------------------------------------------
# Device-aware VMEM budget.  Never hard-code 64 MiB (that is ALL of v7x VMEM);
# leave ~25% headroom for compiler scratch and double buffers.
#   128 MiB parts (v5e/v6e) -> 96 MiB scoped limit
#    64 MiB parts (v7x)     -> 48 MiB scoped limit
# ----------------------------------------------------------------------------
@lru_cache(maxsize=None)
def _vmem_limit_bytes():
    cap = 128 * 1024 * 1024
    try:
        cap = int(getattr(pltpu.get_tpu_info(), "vmem_capacity_bytes", cap))
    except Exception:
        pass
    return max(int(cap * 3 // 4), 32 * 1024 * 1024)


def _pick_tile(dim, preferred, align):
    """Largest candidate <= preferred dividing `dim` with TPU alignment;
    otherwise the full extent (a full-extent block is always legal)."""
    cand = preferred
    while cand >= align:
        if dim % cand == 0:
            return cand
        cand //= 2
    return dim


# ----------------------------------------------------------------------------
# Kernel 1: tiled linear  y = x @ W^T + b   (W in PyTorch (out, in) layout)
# ----------------------------------------------------------------------------
def _linear_kernel(x_ref, w_ref, b_ref, o_ref, acc_ref):
    k = pl.program_id(2)

    @pl.when(k == 0)
    def _():
        acc_ref[...] = jnp.zeros_like(acc_ref)

    # Contract on axis 1 of BOTH operands -> no in-kernel transpose of W.
    acc_ref[...] += lax.dot_general(
        x_ref[...], w_ref[...],
        dimension_numbers=(((1,), (1,)), ((), ())),
        preferred_element_type=jnp.float32)

    @pl.when(k == pl.num_programs(2) - 1)
    def _():
        # bias is kept in f32 and added to the f32 accumulator directly
        o_ref[...] = (acc_ref[...] + b_ref[...]).astype(o_ref.dtype)


def linear(x2d, w, b, *, tm=256, tn=512, tk=1024):
    """x2d: (M, K), w: (N, K) [PyTorch (out,in)], b: (N,) f32 -> (M, N)."""
    M, K = x2d.shape
    N = w.shape[0]
    tm = _pick_tile(M, tm, 8)
    tn = _pick_tile(N, tn, 128)     # lane-aligned output tile (lane-dense vst)
    tk = _pick_tile(K, tk, 128)
    grid = (M // tm, N // tn, K // tk)

    w = w.astype(x2d.dtype)
    b2d = b.reshape(1, N).astype(jnp.float32)
    itemsize = jnp.dtype(x2d.dtype).itemsize
    cost = pl.CostEstimate(
        flops=2 * M * N * K,
        transcendentals=0,
        bytes_accessed=(M * K + N * K + M * N) * itemsize + N * 4)

    return pl.pallas_call(
        _linear_kernel,
        out_shape=jax.ShapeDtypeStruct((M, N), x2d.dtype),
        grid_spec=pltpu.PrefetchScalarGridSpec(
            num_scalar_prefetch=0,
            grid=grid,
            in_specs=[
                pl.BlockSpec((tm, tk), lambda i, j, k: (i, k)),
                pl.BlockSpec((tn, tk), lambda i, j, k: (j, k)),
                pl.BlockSpec((1, tn), lambda i, j, k: (0, j)),
            ],
            out_specs=pl.BlockSpec((tm, tn), lambda i, j, k: (i, j)),
            scratch_shapes=[pltpu.VMEM((tm, tn), jnp.float32)],
        ),
        compiler_params=pltpu.CompilerParams(
            dimension_semantics=("parallel", "parallel", "arbitrary"),
            vmem_limit_bytes=_vmem_limit_bytes()),
        cost_estimate=cost,
    )(x2d, w, b2d)


# ----------------------------------------------------------------------------
# BlockSpec index-map factories (plain closures over Python ints)
# ----------------------------------------------------------------------------
def _q_map_flash(col):
    return lambda b, ti, si: (b, ti, col)


def _kv_map_flash(col):
    return lambda b, ti, si: (b, si, col)


def _q_map_w(col):
    return lambda b, ti: (b, ti, col)


def _kv_map_w(col):
    return lambda b, ti: (b, 0, col)


# ----------------------------------------------------------------------------
# Kernel 2a: flash-style SDPA (fast path, no attention-weights output)
#   grid = (B, T_tiles, S_tiles); online softmax over the trailing S axis.
# ----------------------------------------------------------------------------
def _make_flash_kernel(num_heads, head_dim, q_off, k_off, v_off):
    D = head_dim

    def kernel(q_ref, kv_ref, o_ref, m_ref, l_ref, acc_ref):
        si = pl.program_id(2)

        @pl.when(si == 0)
        def _():
            m_ref[...] = jnp.full_like(m_ref, -jnp.inf)
            l_ref[...] = jnp.zeros_like(l_ref)
            acc_ref[...] = jnp.zeros_like(acc_ref)

        for h in range(num_heads):              # static unroll over heads
            qh = q_ref[0, :, q_off + h * D:q_off + (h + 1) * D]   # (Tt, D)
            kh = kv_ref[0, :, k_off + h * D:k_off + (h + 1) * D]  # (St, D)
            vh = kv_ref[0, :, v_off + h * D:v_off + (h + 1) * D]  # (St, D)

            s = lax.dot_general(qh, kh, (((1,), (1,)), ((), ())),
                                preferred_element_type=jnp.float32)  # (Tt, St)
            m_prev = m_ref[:, h:h + 1]
            l_prev = l_ref[:, h:h + 1]
            m_new = jnp.maximum(m_prev, jnp.max(s, axis=-1, keepdims=True))
            alpha = jnp.exp(m_prev - m_new)
            p = jnp.exp(s - m_new)
            l_ref[:, h:h + 1] = alpha * l_prev + jnp.sum(p, axis=-1, keepdims=True)
            m_ref[:, h:h + 1] = m_new

            # Stream this head's partial PV result straight into its lane slice
            # of the f32 accumulator (no per-head list, no final concat).
            lo = h * D
            acc_ref[:, lo:lo + D] = (
                alpha * acc_ref[:, lo:lo + D]
                + jnp.dot(p.astype(vh.dtype), vh,
                          preferred_element_type=jnp.float32))

        @pl.when(si == pl.num_programs(2) - 1)
        def _():
            for h in range(num_heads):
                lo = h * D
                inv = pl.reciprocal(l_ref[:, h:h + 1], approx=False)
                o_ref[0, :, lo:lo + D] = (acc_ref[:, lo:lo + D] * inv
                                          ).astype(o_ref.dtype)

    return kernel


def _sdpa_flash(q_arr, kv_arr, *, embed_dim, num_heads,
                q_block_w, q_block_col, q_off,
                kv_block_w, kv_block_col, k_off, v_off):
    B, T, _ = q_arr.shape
    S = kv_arr.shape[1]
    E = embed_dim
    D = E // num_heads
    dt = q_arr.dtype
    itemsize = jnp.dtype(dt).itemsize

    big_vmem = _vmem_limit_bytes() >= 80 * 1024 * 1024
    t_pref = 256
    s_pref = 512 if big_vmem else 256      # halve the KV tile on 64-MiB parts (v7x)
    Tt = _pick_tile(T, t_pref, 8)
    St = _pick_tile(S, s_pref, 128)
    grid = (B, T // Tt, S // St)

    cost = pl.CostEstimate(
        flops=4 * B * T * S * E,
        transcendentals=B * num_heads * T * S,
        bytes_accessed=(B * T * (q_block_w + E)
                        + B * (T // Tt) * S * kv_block_w) * itemsize)

    return pl.pallas_call(
        _make_flash_kernel(num_heads, D, q_off, k_off, v_off),
        out_shape=jax.ShapeDtypeStruct((B, T, E), dt),
        grid_spec=pltpu.PrefetchScalarGridSpec(
            num_scalar_prefetch=0,
            grid=grid,
            in_specs=[
                pl.BlockSpec((1, Tt, q_block_w), _q_map_flash(q_block_col)),
                pl.BlockSpec((1, St, kv_block_w), _kv_map_flash(kv_block_col)),
            ],
            out_specs=pl.BlockSpec((1, Tt, E), lambda b, ti, si: (b, ti, 0)),
            scratch_shapes=[
                pltpu.VMEM((Tt, num_heads), jnp.float32),   # running max  m
                pltpu.VMEM((Tt, num_heads), jnp.float32),   # running sum  l
                pltpu.VMEM((Tt, E), jnp.float32),           # f32 output accumulator
            ],
        ),
        compiler_params=pltpu.CompilerParams(
            dimension_semantics=("parallel", "parallel", "arbitrary"),
            vmem_limit_bytes=_vmem_limit_bytes()),
        cost_estimate=cost,
    )(q_arr, kv_arr)


# ----------------------------------------------------------------------------
# Kernel 2b: SDPA with materialized attention weights (compat path)
#   grid = (B, T_tiles); exact softmax over the full S extent per head.
# ----------------------------------------------------------------------------
def _make_weights_kernel(num_heads, head_dim, q_off, k_off, v_off):
    D = head_dim

    def kernel(q_ref, kv_ref, o_ref, w_ref):
        for h in range(num_heads):
            qh = q_ref[0, :, q_off + h * D:q_off + (h + 1) * D]   # (Tt, D)
            kh = kv_ref[0, :, k_off + h * D:k_off + (h + 1) * D]  # (S, D)
            vh = kv_ref[0, :, v_off + h * D:v_off + (h + 1) * D]  # (S, D)

            s = lax.dot_general(qh, kh, (((1,), (1,)), ((), ())),
                                preferred_element_type=jnp.float32)  # (Tt, S)
            s = s - jnp.max(s, axis=-1, keepdims=True)
            e = jnp.exp(s)
            # exact reciprocal: returned weights sum to 1 (review concern)
            p = e * pl.reciprocal(jnp.sum(e, axis=-1, keepdims=True), approx=False)

            w_ref[0, h] = p.astype(w_ref.dtype)          # write weights per head
            lo = h * D
            o_ref[0, :, lo:lo + D] = jnp.dot(            # write PV per head
                p.astype(vh.dtype), vh,
                preferred_element_type=jnp.float32).astype(o_ref.dtype)

    return kernel


def _sdpa_weights(q_arr, kv_arr, *, embed_dim, num_heads,
                  q_block_w, q_block_col, q_off,
                  kv_block_w, kv_block_col, k_off, v_off):
    B, T, _ = q_arr.shape
    S = kv_arr.shape[1]
    E = embed_dim
    D = E // num_heads
    dt = q_arr.dtype
    itemsize = jnp.dtype(dt).itemsize

    # T tile bounds the (1, H, Tt, S) weights block; exact softmax needs full S.
    Tt = _pick_tile(T, 128, 8)
    grid = (B, T // Tt)

    cost = pl.CostEstimate(
        flops=4 * B * T * S * E,
        transcendentals=B * num_heads * T * S,
        bytes_accessed=(B * T * (q_block_w + E) + B * S * kv_block_w
                        + B * num_heads * T * S) * itemsize)

    return pl.pallas_call(
        _make_weights_kernel(num_heads, D, q_off, k_off, v_off),
        out_shape=(jax.ShapeDtypeStruct((B, T, E), dt),
                   jax.ShapeDtypeStruct((B, num_heads, T, S), dt)),
        grid_spec=pltpu.PrefetchScalarGridSpec(
            num_scalar_prefetch=0,
            grid=grid,
            in_specs=[
                pl.BlockSpec((1, Tt, q_block_w), _q_map_w(q_block_col)),
                pl.BlockSpec((1, S, kv_block_w), _kv_map_w(kv_block_col)),
            ],
            out_specs=(
                pl.BlockSpec((1, Tt, E), lambda b, ti: (b, ti, 0)),
                pl.BlockSpec((1, num_heads, Tt, S), lambda b, ti: (b, 0, ti, 0)),
            ),
        ),
        compiler_params=pltpu.CompilerParams(
            dimension_semantics=("parallel", "parallel"),
            vmem_limit_bytes=_vmem_limit_bytes()),
        cost_estimate=cost,
    )(q_arr, kv_arr)


# ----------------------------------------------------------------------------
# Parameter preparation (one-time) and module forward
# ----------------------------------------------------------------------------
def prepare_params(params, embed_dim, num_heads):
    """Fold 1/sqrt(head_dim) into the Q projection and build fused weights.
    Fused self-attention slab column order is [K | V | Q]."""
    assert embed_dim % num_heads == 0
    scaling = (embed_dim // num_heads) ** (-0.5)
    qw = params["q_w"] * scaling
    qb = params["q_b"] * scaling
    return {
        "kvq_w": jnp.concatenate([params["k_w"], params["v_w"], qw], axis=0),
        "kvq_b": jnp.concatenate([params["k_b"], params["v_b"], qb], axis=0),
        "kv_w": jnp.concatenate([params["k_w"], params["v_w"]], axis=0),
        "kv_b": jnp.concatenate([params["k_b"], params["v_b"]], axis=0),
        "q_w": qw, "q_b": qb,
        "k_w": params["k_w"], "k_b": params["k_b"],
        "v_w": params["v_w"], "v_b": params["v_b"],
        "o_w": params["o_w"], "o_b": params["o_b"],
    }


def multi_head_attention(prep, query, key, value, num_heads, need_weights=True):
    """Eval-mode forward of the PyTorch MultiHeadAttention module.
    need_weights=False is the fast path (flash SDPA, no (B,H,T,S) HBM write).
    """
    B, T, E = query.shape
    S = key.shape[1]

    if query is key and key is value:
        # Self-attention: single fused (3E, E) GEMM -> (B, T, 3E) slab [K|V|Q].
        slab = linear(query.reshape(B * T, E),
                      prep["kvq_w"], prep["kvq_b"]).reshape(B, T, 3 * E)
        q_arr, kv_arr = slab, slab
        if E % 128 == 0:
            # lane-aligned column blocks: Q = cols [2E:3E], K|V = cols [0:2E]
            q_cfg = dict(q_block_w=E, q_block_col=2, q_off=0)
            kv_cfg = dict(kv_block_w=2 * E, kv_block_col=0, k_off=0, v_off=E)
        else:
            # (8,128)-safe fallback: full-width 3E blocks, static in-kernel offsets
            q_cfg = dict(q_block_w=3 * E, q_block_col=0, q_off=2 * E)
            kv_cfg = dict(kv_block_w=3 * E, kv_block_col=0, k_off=0, v_off=E)
    else:
        q_arr = linear(query.reshape(B * T, E),
                       prep["q_w"], prep["q_b"]).reshape(B, T, E)
        if key is value:
            # fused (2E, E) K/V projection -> contiguous (B, S, 2E) slab
            kv_arr = linear(key.reshape(B * S, E),
                            prep["kv_w"], prep["kv_b"]).reshape(B, S, 2 * E)
        else:
            # TODO(synk): distinct key/value tensors: two GEMMs plus one XLA lane
            # concat to present a single contiguous KV slab to the SDPA kernel.
            k_arr = linear(key.reshape(B * S, E),
                           prep["k_w"], prep["k_b"]).reshape(B, S, E)
            v_arr = linear(value.reshape(B * S, E),
                           prep["v_w"], prep["v_b"]).reshape(B, S, E)
            kv_arr = jnp.concatenate([k_arr, v_arr], axis=-1)
        q_cfg = dict(q_block_w=E, q_block_col=0, q_off=0)
        kv_cfg = dict(kv_block_w=2 * E, kv_block_col=0, k_off=0, v_off=E)

    if need_weights:
        attn, attn_weights = _sdpa_weights(q_arr, kv_arr, embed_dim=E,
                                           num_heads=num_heads, **q_cfg, **kv_cfg)
    else:
        attn = _sdpa_flash(q_arr, kv_arr, embed_dim=E,
                           num_heads=num_heads, **q_cfg, **kv_cfg)
        attn_weights = None

    out = linear(attn.reshape(B * T, E), prep["o_w"], prep["o_b"]).reshape(B, T, E)
    return out, attn_weights


# ----------------------------------------------------------------------------
# Pure-JAX reference + PyTorch-style init
# ----------------------------------------------------------------------------
def reference_mha(params, query, key, value, num_heads):
    B, T, E = query.shape
    S = key.shape[1]
    D = E // num_heads
    scaling = D ** (-0.5)
    hp = lax.Precision.HIGHEST
    q = (jnp.einsum("bte,oe->bto", query, params["q_w"], precision=hp)
         + params["q_b"]) * scaling
    k = jnp.einsum("bse,oe->bso", key, params["k_w"], precision=hp) + params["k_b"]
    v = jnp.einsum("bse,oe->bso", value, params["v_w"], precision=hp) + params["v_b"]
    q = q.reshape(B, T, num_heads, D).transpose(0, 2, 1, 3)
    k = k.reshape(B, S, num_heads, D).transpose(0, 2, 1, 3)
    v = v.reshape(B, S, num_heads, D).transpose(0, 2, 1, 3)
    s = jnp.einsum("bhtd,bhsd->bhts", q, k, precision=hp)
    p = jax.nn.softmax(s, axis=-1)
    a = jnp.einsum("bhts,bhsd->bhtd", p, v, precision=hp)
    a = a.transpose(0, 2, 1, 3).reshape(B, T, E)
    out = jnp.einsum("bte,oe->bto", a, params["o_w"], precision=hp) + params["o_b"]
    return out, p


def init_params(key, embed_dim):
    bound = 1.0 / math.sqrt(embed_dim)
    keys = jax.random.split(key, 8)

    def u(k, shape):
        return jax.random.uniform(k, shape, jnp.float32, -bound, bound)

    return {
        "q_w": u(keys[0], (embed_dim, embed_dim)), "q_b": u(keys[1], (embed_dim,)),
        "k_w": u(keys[2], (embed_dim, embed_dim)), "k_b": u(keys[3], (embed_dim,)),
        "v_w": u(keys[4], (embed_dim, embed_dim)), "v_b": u(keys[5], (embed_dim,)),
        "o_w": u(keys[6], (embed_dim, embed_dim)), "o_b": u(keys[7], (embed_dim,)),
    }


if __name__ == "__main__":
    RTOL = ATOL = 2e-3

    def run_case(embed_dim, num_heads, B, T, S):
        root = jax.random.PRNGKey(0)
        kp, kq, kk, kval = jax.random.split(root, 4)
        params = init_params(kp, embed_dim)
        prep = prepare_params(params, embed_dim, num_heads)

        # --- self-attention (fused [K|V|Q] GEMM) ------------------------------
        x = jax.random.normal(kq, (B, T, embed_dim), jnp.float32)
        ref_out, ref_w = reference_mha(params, x, x, x, num_heads)
        out, w = multi_head_attention(prep, x, x, x, num_heads, need_weights=True)
        out, w = jax.block_until_ready(out), jax.block_until_ready(w)
        assert out.shape == (B, T, embed_dim) and w.shape == (B, num_heads, T, T)
        assert jnp.allclose(out, ref_out, rtol=RTOL, atol=ATOL)
        assert jnp.allclose(w, ref_w, rtol=RTOL, atol=ATOL)

        out_f, w_f = multi_head_attention(prep, x, x, x, num_heads,
                                          need_weights=False)
        out_f = jax.block_until_ready(out_f)
        assert w_f is None
        assert jnp.allclose(out_f, ref_out, rtol=RTOL, atol=ATOL)

        # --- cross-attention, key is value (fused KV projection) --------------
        query = jax.random.normal(kq, (B, T, embed_dim), jnp.float32)
        mem = jax.random.normal(kk, (B, S, embed_dim), jnp.float32)
        ref_out, ref_w = reference_mha(params, query, mem, mem, num_heads)
        out, w = multi_head_attention(prep, query, mem, mem, num_heads,
                                      need_weights=True)
        out, w = jax.block_until_ready(out), jax.block_until_ready(w)
        assert jnp.allclose(out, ref_out, rtol=RTOL, atol=ATOL)
        assert jnp.allclose(w, ref_w, rtol=RTOL, atol=ATOL)

        # --- cross-attention, distinct key/value, flash fast path -------------
        value = jax.random.normal(kval, (B, S, embed_dim), jnp.float32)
        ref_out, _ = reference_mha(params, query, mem, value, num_heads)
        out, w = multi_head_attention(prep, query, mem, value, num_heads,
                                      need_weights=False)
        out = jax.block_until_ready(out)
        assert w is None
        assert jnp.allclose(out, ref_out, rtol=RTOL, atol=ATOL)

    # E not a multiple of 128 -> exercises the full-width slab fallback layout
    run_case(embed_dim=32, num_heads=4, B=2, T=8, S=8)
    # E a multiple of 128 -> exercises the lane-aligned column-block layout
    run_case(embed_dim=128, num_heads=2, B=1, T=16, S=16)

    print("KERNEL_OK")
</pallas_src>

<mosaic_0001>
module attributes {stable_mosaic.version = 11 : i64} {
  func.func @_linear_kernel(%arg0: i32, %arg1: i32, %arg2: i32, %arg3: memref<16x32xf32, #tpu.memory_space<vmem>>, %arg4: memref<96x32xf32, #tpu.memory_space<vmem>>, %arg5: memref<1x96xf32, #tpu.memory_space<vmem>>, %arg6: memref<16x96xf32, #tpu.memory_space<vmem>>, %arg7: memref<16x96xf32, #tpu.memory_space<vmem>>) attributes {dimension_semantics = [#tpu.dimension_semantics<parallel>, #tpu.dimension_semantics<parallel>, #tpu.dimension_semantics<arbitrary>], iteration_bounds = array<i64: 1, 1, 1>, scalar_prefetch = 0 : i64, scratch_operands = 1 : i64, tpu.core_type = #tpu.core_type<tc>, window_params = [{transform_indices = @transform_0, window_bounds = array<i64: 16, 32>}, {transform_indices = @transform_1, window_bounds = array<i64: 96, 32>}, {transform_indices = @transform_2, window_bounds = array<i64: 1, 96>}, {transform_indices = @transform_3, window_bounds = array<i64: 16, 96>}]} {
    %c0_i32 = arith.constant 0 : i32
    %0 = arith.cmpi eq, %arg2, %c0_i32 : i32
    %1 = arith.extui %0 : i1 to i32
    %c0_i32_0 = arith.constant 0 : i32
    %2 = arith.cmpi ne, %1, %c0_i32_0 : i32
    scf.if %2 {
      %cst_10 = arith.constant 0.000000e+00 : f32
      %12 = vector.broadcast %cst_10 : f32 to vector<16x96xf32>
      %c0_11 = arith.constant 0 : index
      %c0_12 = arith.constant 0 : index
      %13 = vector.load %arg7[%c0_11, %c0_12] : memref<16x96xf32, #tpu.memory_space<vmem>>, vector<16x96xf32>
      tpu.vector_store %arg7[%c0_11, %c0_12], %12 {strides = array<i32>} : memref<16x96xf32, #tpu.memory_space<vmem>>, vector<16x96xf32>,
    } else {
    }
    %c0 = arith.constant 0 : index
    %c0_1 = arith.constant 0 : index
    %3 = vector.load %arg7[%c0, %c0_1] : memref<16x96xf32, #tpu.memory_space<vmem>>, vector<16x96xf32>
    %c0_2 = arith.constant 0 : index
    %c0_3 = arith.constant 0 : index
    %4 = vector.load %arg3[%c0_2, %c0_3] : memref<16x32xf32, #tpu.memory_space<vmem>>, vector<16x32xf32>
    %c0_4 = arith.constant 0 : index
    %c0_5 = arith.constant 0 : index
    %5 = vector.load %arg4[%c0_4, %c0_5] : memref<96x32xf32, #tpu.memory_space<vmem>>, vector<96x32xf32>
    %cst = arith.constant dense<0.000000e+00> : vector<16x96xf32>
    %6 = tpu.matmul %4, %5, %cst {dimension_numbers = #tpu.dot_dimension_numbers<[1], [1], [0], [0], [0, 0, 1, 0], [], []>} : vector<16x32xf32>, vector<96x32xf32>, vector<16x96xf32> -> vector<16x96xf32>
    %7 = arith.addf %3, %6 : vector<16x96xf32>
    %c0_6 = arith.constant 0 : index
    %c0_7 = arith.constant 0 : index
    %8 = vector.load %arg7[%c0_6, %c0_7] : memref<16x96xf32, #tpu.memory_space<vmem>>, vector<16x96xf32>
    tpu.vector_store %arg7[%c0_6, %c0_7], %7 {strides = array<i32>} : memref<16x96xf32, #tpu.memory_space<vmem>>, vector<16x96xf32>,
    %c0_i32_8 = arith.constant 0 : i32
    %9 = arith.cmpi eq, %arg2, %c0_i32_8 : i32
    %10 = arith.extui %9 : i1 to i32
    %c0_i32_9 = arith.constant 0 : i32
    %11 = arith.cmpi ne, %10, %c0_i32_9 : i32
    scf.if %11 {
      %c0_10 = arith.constant 0 : index
      %c0_11 = arith.constant 0 : index
      %12 = vector.load %arg7[%c0_10, %c0_11] : memref<16x96xf32, #tpu.memory_space<vmem>>, vector<16x96xf32>
      %c0_12 = arith.constant 0 : index
      %c0_13 = arith.constant 0 : index
      %13 = vector.load %arg5[%c0_12, %c0_13] : memref<1x96xf32, #tpu.memory_space<vmem>>, vector<1x96xf32>
      %14 = vector.broadcast %13 : vector<1x96xf32> to vector<16x96xf32>
      %15 = arith.addf %12, %14 : vector<16x96xf32>
      %c0_14 = arith.constant 0 : index
      %c0_15 = arith.constant 0 : index
      %16 = vector.load %arg6[%c0_14, %c0_15] : memref<16x96xf32, #tpu.memory_space<vmem>>, vector<16x96xf32>
      tpu.vector_store %arg6[%c0_14, %c0_15], %15 {strides = array<i32>} : memref<16x96xf32, #tpu.memory_space<vmem>>, vector<16x96xf32>,
    } else {
    }
    return
  }
  func.func @transform_0(%arg0: i32, %arg1: i32, %arg2: i32) -> (i32, i32) {
    %c0_i32 = arith.constant 0 : i32
    return %arg0, %arg2 : i32, i32
  }
  func.func @transform_1(%arg0: i32, %arg1: i32, %arg2: i32) -> (i32, i32) {
    %c0_i32 = arith.constant 0 : i32
    return %arg1, %arg2 : i32, i32
  }
  func.func @transform_2(%arg0: i32, %arg1: i32, %arg2: i32) -> (i32, i32) {
    %c0_i32 = arith.constant 0 : i32
    %c0_i32_0 = arith.constant 0 : i32
    return %c0_i32, %arg1 : i32, i32
  }
  func.func @transform_3(%arg0: i32, %arg1: i32, %arg2: i32) -> (i32, i32) {
    %c0_i32 = arith.constant 0 : i32
    return %arg0, %arg1 : i32, i32
  }
}

</mosaic_0001>

<bundles_post_ra>
// kernel: tpu_custom_call.1
= control target key start
LH: loop header
LB: loop body
LE: loop exit
PB: predicated region body
PF: predicated region fallthrough
CT: control target
= control target key end

     0   :  { %8 = vsyncpa [#allocation4], 0  ;;  %s556_s0 = inlined_call_operand.hbm [shape: f32[16,32], index: 0, kind: input, shape index: {}]   ;;  %s557_s1 = inlined_call_operand.hbm [shape: f32[96,32], index: 1, kind: input, shape index: {}]   ;;  %s558_s2 = inlined_call_operand.hbm [shape: f32[1,96], index: 2, kind: input, shape index: {}]   ;;  %s559_s3 = inlined_call_operand.hbm [shape: f32[16,96], index: 3, kind: output, shape index: {}]  }
   0x1   :  { %9 = vsyncpa [#allocation7], 0 }
   0x2   :  { %10 = vsyncpa [#allocation5], 0  ;;  %s427_s12 = smov [#allocation6]   ;;  %s428_s14 = smov [#allocation3]  }
   0x3   :  { %s28_s13 = sshll.u32 %s427_s12, 4  ;;  %s16_s15 = sshll.u32 %s428_s14, 4  ;;  %s29_s13 = int_to_ptr.vmem [resolvable:$true] %s28_s13  ;;  %s454_s15 = int_to_ptr.vmem [resolvable:$true] %s16_s15 }
   0x4   :  { %s333_s18 = scalar_lea.hbm %s557_s1, 1536 }
   0x5   :  { %p334_p0 = scmp.ne.s32.totalorder %s557_s1, %s333_s18  ;;  %p337_p1 = scmp.lt.u32.totalorder %s333_s18, %s557_s1 }
   0x7   :  { %p339_p2 = pnand %p337_p1, %p334_p0 }
   0x9   :  { %342 = shalt.err (!%p339_p2)
}
   0xa   :  { %s343_s23 = scalar_lea.vmem %s29_s13, 1536  ;;  %p348_p4 = scmp.lt.s32.totalorder %s29_s13, %s29_s13 }
   0xb   :  { %p344_p3 = scmp.ne.s32.totalorder %s29_s13, %s343_s23  ;;  %p349_p5 = scmp.lt.s32.totalorder %s343_s23, %s343_s23 }
   0xd   :  { %p350_p6 = por %p349_p5, %p348_p4 }
   0xf   :  { %p351_p7 = pnand %p350_p6, %p344_p3 }
  0x11   :  { %354 = shalt.err (!%p351_p7)
}
  0x12   :  { %s429_s24 = smov 128   ;;  %s430_s25 = smov 8  }
  0x13   :  { %34 = dma.hbm_to_vmem [thread:$0]  %s557_s1, 1536, %s29_s13, [#allocation7], %s429_s24, %s429_s24, %s430_s25  }
  0x14   :  { %s355_s30 = scalar_lea.hbm %s556_s0, 256 }
  0x15   :  { %p356_p8 = scmp.ne.s32.totalorder %s556_s0, %s355_s30  ;;  %p359_p9 = scmp.lt.u32.totalorder %s355_s30, %s556_s0 }
  0x17   :  { %p361_p10 = pnand %p359_p9, %p356_p8 }
  0x19   :  { %364 = shalt.err (!%p361_p10)
}
  0x1a   :  { %s365_s8 = scalar_lea.vmem %s454_s15, 256  ;;  %p370_p12 = scmp.lt.s32.totalorder %s454_s15, %s454_s15 }
  0x1b   :  { %p366_p11 = scmp.ne.s32.totalorder %s454_s15, %s365_s8  ;;  %p371_p13 = scmp.lt.s32.totalorder %s365_s8, %s365_s8 }
  0x1d   :  { %p372_p0 = por %p371_p13, %p370_p12 }
  0x1f   :  { %p373_p1 = pnand %p372_p0, %p366_p11 }
  0x21   :  { %376 = shalt.err (!%p373_p1)
}
  0x22   :  { %22 = dma.hbm_to_vmem [thread:$0]  %s556_s0, 256, %s454_s15, [#allocation4], %s429_s24, %s429_s24, %s430_s25  }
  0x23   :  { %s431_s10 = smov [#allocation8]   ;;  %s377_s14 = scalar_lea.hbm %s558_s2, 16 }
  0x24   :  { %s41_s11 = sshll.u32 %s431_s10, 4  ;;  %p378_p2 = scmp.ne.s32.totalorder %s558_s2, %s377_s14  ;;  %s42_s11 = int_to_ptr.vmem [resolvable:$true] %s41_s11 }
  0x25   :  { %p381_p3 = scmp.lt.u32.totalorder %s377_s14, %s558_s2 }
  0x27   :  { %p383_p4 = pnand %p381_p3, %p378_p2 }
  0x29   :  { %386 = shalt.err (!%p383_p4)
}
  0x2a   :  { %s387_s20 = scalar_lea.vmem %s42_s11, 16  ;;  %s391_s0 = scalar_lea.vmem %s42_s11, 32 }
  0x2b   :  { %p388_p5 = scmp.ne.s32.totalorder %s42_s11, %s387_s20  ;;  %p392_p6 = scmp.lt.s32.totalorder %s42_s11, %s42_s11 }
  0x2c   :  { %p393_p7 = scmp.lt.s32.totalorder %s391_s0, %s387_s20 }
  0x2e   :  { %p394_p8 = por %p393_p7, %p392_p6 }
  0x30   :  { %p395_p9 = pnand %p394_p8, %p388_p5 }
  0x32   :  { %398 = shalt.err (!%p395_p9)
}
  0x33   :  { %44 = dma.hbm_to_vmem [thread:$0]  %s558_s2, 16, %s42_s11, [#allocation7]  }
  0x34   :  { %421 = dma.done.wait [#allocation4], 256  }
  0x35   :  { %422 = vsyncadd [#allocation4], 4294967040 }
  0x36   :  { %423 = dma.done.wait [#allocation7], 1552  }
  0x37   :  { %424 = vsyncadd [#allocation7], 4294965744  ;;  %vm58_vm0 = vcmask 785408   ;;  %v432_v0 = vmov 0.0   ;;  %vm77_vm1 = vcmask 261120   ;;  %v65_v2 = vld [vmem:[#allocation6] sm:$0xff] }
  0x38   :  { %60 = vst.msk [vmem:[#allocation2 + $0x8] sm:$0xff] %vm58_vm0, %v432_v0  ;;  %59 = vst.msk [vmem:[#allocation2] sm:$0xff] %vm58_vm0, %v432_v0  ;;  %v66_v3 = vld [vmem:[#allocation6 + $0x8] sm:$0xff]  ;;  %v67_v4 = vld [vmem:[#allocation6 + $0x10] sm:$0xff]  ;;  %s433_s2 = smov [#allocation9]  }
  0x39   :  { %vm507_vm2 = vmpackc.low %vm77_vm1, %vm77_vm1  ;;  %v290_v5 = vpack.c.bf16 %v66_v3, %v65_v2  ;;  %v68_v6 = vld [vmem:[#allocation6 + $0x18] sm:$0xff]  ;;  %v63_v8 = vld [vmem:[#allocation3] sm:$0xff]  ;;  %s221_s22 = sshll.u32 %s433_s2, 4  ;;  %s222_s22 = int_to_ptr.vmem [resolvable:$true] %s221_s22 }
  0x3a   :  { %v296_v7 = vpack.c.bf16 %v68_v6, %v67_v4  ;;  %287 = vmatprep.mubr.msk.f32.mxu0 %vm77_vm1, %v63_v8  ;;  %v69_v9 = vld [vmem:[#allocation6 + $0x20] sm:$0xff]  ;;  %v70_v10 = vld [vmem:[#allocation6 + $0x28] sm:$0xff]  ;;  %v71_v12 = vld [vmem:[#allocation6 + $0x30] sm:$0xff]  ;;  %s399_s23 = scalar_lea.vmem %s222_s22, 256  ;;  %p404_p11 = scmp.lt.s32.totalorder %s222_s22, %s222_s22 }
  0x3b   :  { %292 = vmatprep.subr.msk.bf16.mxu0 %vm507_vm2, %v290_v5  ;;  %v302_v11 = vpack.c.bf16 %v70_v10, %v69_v9  ;;  %v72_v13 = vld [vmem:[#allocation6 + $0x38] sm:$0xff]  ;;  %v73_v15 = vld [vmem:[#allocation6 + $0x40] sm:$0xff]  ;;  %v74_v16 = vld [vmem:[#allocation6 + $0x48] sm:$0xff]  ;;  %p400_p10 = scmp.ne.s32.totalorder %s222_s22, %s399_s23  ;;  %p405_p12 = scmp.lt.s32.totalorder %s399_s23, %s399_s23 }
  0x3c   :  { %295 = vmatpush3.bf16.xpose.msk.msra.mxu0 %vm507_vm2, %v290_v5  ;;  %v308_v14 = vpack.c.bf16 %v72_v13, %v71_v12  ;;  %v314_v17 = vpack.c.bf16 %v74_v16, %v73_v15  ;;  %v75_v18 = vld [vmem:[#allocation6 + $0x50] sm:$0xff]  ;;  %v76_v19 = vld [vmem:[#allocation6 + $0x58] sm:$0xff]  ;;  %v248_v28 = vld [vmem:[#allocation8] ss:$0 sm:$0xff] }
  0x3d   :  { %298 = vmatprep.subr.msk.bf16.mxu0 %vm507_vm2, %v296_v7  ;;  %v320_v20 = vpack.c.bf16 %v76_v19, %v75_v18  ;;  %v64_v21 = vld [vmem:[#allocation3 + $0x8] sm:$0xff]  ;;  %p406_p13 = por %p405_p12, %p404_p11 }
  0x3f   :  { %v62_v22 = vld [vmem:[#allocation2 + $0x8] sm:$0xff]  ;;  %v61_v23 = vld [vmem:[#allocation2] sm:$0xff]  ;;  %p407_p0 = pnand %p406_p13, %p400_p10 }
  0x44   :  { %301 = vmatpush3.bf16.xpose.msk.msra.mxu0 %vm507_vm2, %v296_v7 }
  0x45   :  { %304 = vmatprep.subr.msk.bf16.mxu0 %vm507_vm2, %v302_v11 }
  0x4c   :  { %307 = vmatpush3.bf16.xpose.msk.msra.mxu0 %vm507_vm2, %v302_v11 }
  0x4d   :  { %310 = vmatprep.subr.msk.bf16.mxu0 %vm507_vm2, %v308_v14 }
  0x54   :  { %313 = vmatpush3.bf16.xpose.msk.msra.mxu0 %vm507_vm2, %v308_v14 }
  0x55   :  { %316 = vmatprep.subr.msk.bf16.mxu0 %vm507_vm2, %v314_v17 }
  0x5c   :  { %319 = vmatpush3.bf16.xpose.msk.msra.mxu0 %vm507_vm2, %v314_v17 }
  0x5d   :  { %322 = vmatprep.subr.msk.bf16.mxu0 %vm507_vm2, %v320_v20 }
  0x64   :  { %325 = vmatpush3.bf16.xpose.msk.msra.mxu0 %vm507_vm2, %v320_v20 }
  0x6b   :  { %288 = vmatmul.mubr.msk.f32.vlgmr.msra.gmra.mrb[0].mxu0 %vm77_vm1, %v64_v21 }
 0x13e   :  { %v289_v24 = vpop.f32.mrb[0].mxu0 }
 0x13f   :  { %v196_v25 = vadd.f32 %v289_v24, %v62_v22  ;;  %v186_v26 = vpop.f32.mrb[1].mxu0 }
 0x140   :  { %v195_v27 = vadd.f32 %v186_v26, %v61_v23 }
 0x141   :  { %199 = vst.msk [vmem:[#allocation2 + $0x8] sm:$0xff] %vm58_vm0, %v196_v25 }
 0x142   :  { %198 = vst.msk [vmem:[#allocation2] sm:$0xff] %vm58_vm0, %v195_v27 }
 0x148   :  { %v204_v29 = vld [vmem:[#allocation2 + $0x8] sm:$0xff] }
 0x149   :  { %v203_v30 = vld [vmem:[#allocation2] sm:$0xff]  ;;  %v213_v31 = vadd.f32 %v248_v28, %v204_v29 }
 0x14a   :  { %v212_v32 = vadd.f32 %v248_v28, %v203_v30 }
 0x14b   :  { %215 = vst.msk [vmem:[#allocation9 + $0x8] sm:$0xff] %vm58_vm0, %v213_v31 }
 0x14c   :  { %214 = vst.msk [vmem:[#allocation9] sm:$0xff] %vm58_vm0, %v212_v32 }
 0x14d   :  { %410 = shalt.err (!%p407_p0)
}
 0x14e   :  { %s411_s28 = scalar_lea.hbm %s559_s3, 256 }
 0x14f   :  { %p412_p1 = scmp.ne.s32.totalorder %s559_s3, %s411_s28  ;;  %p415_p2 = scmp.lt.u32.totalorder %s411_s28, %s559_s3 }
 0x151   :  { %p417_p3 = pnand %p415_p2, %p412_p1 }
 0x153   :  { %420 = shalt.err (!%p417_p3)
}
 0x154   :  { %227 = dma.vmem_to_hbm [thread:$0]  %s222_s22, 256, %s559_s3, [#allocation5], %s429_s24, %s429_s24, %s430_s25  }
 0x155   :  { %425 = dma.done.wait [#allocation5], 256  }
 0x156   :  { %426 = vsyncadd [#allocation5], 4294967040 }
 0x157   :  { %231 = vsyncpa [#allocation4], 1 }
 0x158   :  { %232 = vsyncpa [#allocation7], 1 }
 0x159   :  { %233 = vsyncpa [#allocation5], 1 }

</bundles_post_ra>
